<compile_context>
chip_gen: v7x
topology: tpu7x:2x2x1
jax: 0.10.0
libtpu: 0.0.40
codegen_flags: <defaults>
</compile_context>

<pallas_src>
import functools

import jax
import jax.numpy as jnp
from jax import lax
from jax.experimental import pallas as pl
from jax.experimental.pallas import tpu as pltpu

LANE = 128
SUBLANE = 8
MAX_BLOCK_ROWS = 2048  # 2048 x 128 x f32 = 1 MiB per input per pipeline buffer


def _iou_kernel(x_ref, y_ref, inter_ref, total_ref, *,
                total_blocks, inner_steps, tail_valid, use_sigmoid, need_mask):
    c = pl.program_id(0)           # parallel slice (sharded across TCs on v7x)
    i = pl.program_id(1)           # sequential reduction axis
    gblk = c * inner_steps + i     # global row-block index (small int32)

    # Zero this slice's resident accumulator blocks at the start of its pass.
    @pl.when(i == 0)
    def _():
        inter_ref[...] = jnp.zeros_like(inter_ref)
        total_ref[...] = jnp.zeros_like(total_ref)

    x = x_ref[...].astype(jnp.float32)
    y = y_ref[...].astype(jnp.float32)
    if use_sigmoid:
        x = jax.nn.sigmoid(x)      # EUP; hidden under the DMA

    def accumulate(xv, yv):
        # Fold (block_rows, 128) -> (1, 8, 128) with layout-preserving reshape
        # + pure VPU adds; cross-lane reduction is deferred to the wrapper.
        inter_ref[...] += (xv * yv).reshape(-1, SUBLANE, LANE).sum(
            axis=0, keepdims=True)
        total_ref[...] += (xv + yv).reshape(-1, SUBLANE, LANE).sum(
            axis=0, keepdims=True)

    if need_mask:
        # Every block but the last is fully valid: no masking work.
        @pl.when(gblk < total_blocks - 1)
        def _():
            accumulate(x, y)

        # Last block only: mask zero-padded / out-of-bounds tail elements.
        @pl.when(gblk == total_blocks - 1)
        def _():
            lidx = (lax.broadcasted_iota(jnp.int32, x.shape, 0) * LANE
                    + lax.broadcasted_iota(jnp.int32, x.shape, 1))
            valid = lidx < tail_valid
            accumulate(jnp.where(valid, x, 0.0), jnp.where(valid, y, 0.0))
    else:
        # gblk can exceed total_blocks-1 only for the duplicated (clamped)
        # pad step of the last parallel slice when total_blocks is odd.
        @pl.when(gblk < total_blocks)
        def _():
            accumulate(x, y)


def iou_loss(inputs, targets, smooth=1.0, use_sigmoid=False,
             max_block_rows=MAX_BLOCK_ROWS):
    """Pallas-TPU equivalent of IoULoss.forward (returns a scalar f32)."""
    x = inputs.reshape(-1)
    y = targets.reshape(-1)
    n = int(x.shape[0])

    # Pad only up to an (8 x 128)-element multiple (no-op for aligned sizes).
    align = LANE * SUBLANE
    n_pad = pl.cdiv(n, align) * align
    if n_pad != n:
        x = jnp.pad(x, (0, n_pad - n))
        y = jnp.pad(y, (0, n_pad - n))

    rows = n_pad // LANE                       # multiple of 8
    block_rows = min(max_block_rows, rows)     # multiple of 8
    total_blocks = pl.cdiv(rows, block_rows)
    num_par = 2 if total_blocks >= 2 else 1    # 2-way split for v7x megacore
    inner_steps = pl.cdiv(total_blocks, num_par)

    block_elems = block_rows * LANE
    tail_valid = n - (total_blocks - 1) * block_elems  # python int, in (0, block_elems]
    ragged = (rows % block_rows) != 0
    # Masking needed if the last block reads OOB garbage (ragged) or if
    # sigmoid would turn explicit zero-padding into 0.5.
    need_mask = ragged or (use_sigmoid and tail_valid < block_elems)

    x2 = x.reshape(rows, LANE)
    y2 = y.reshape(rows, LANE)

    def in_map(c, i):
        # Clamp so the possible extra step of the last parallel slice re-reads
        # the final block instead of DMA-ing past the end of the array.
        return (jnp.minimum(c * inner_steps + i, total_blocks - 1), 0)

    kernel = functools.partial(
        _iou_kernel,
        total_blocks=total_blocks,
        inner_steps=inner_steps,
        tail_valid=tail_valid,
        use_sigmoid=use_sigmoid,
        need_mask=need_mask,
    )

    inter_parts, total_parts = pl.pallas_call(
        kernel,
        out_shape=(
            jax.ShapeDtypeStruct((num_par, SUBLANE, LANE), jnp.float32),
            jax.ShapeDtypeStruct((num_par, SUBLANE, LANE), jnp.float32),
        ),
        grid_spec=pltpu.PrefetchScalarGridSpec(
            num_scalar_prefetch=0,
            grid=(num_par, inner_steps),
            in_specs=[
                pl.BlockSpec((block_rows, LANE), in_map),
                pl.BlockSpec((block_rows, LANE), in_map),
            ],
            out_specs=(
                pl.BlockSpec((1, SUBLANE, LANE), lambda c, i: (c, 0, 0)),
                pl.BlockSpec((1, SUBLANE, LANE), lambda c, i: (c, 0, 0)),
            ),
        ),
        compiler_params=pltpu.CompilerParams(
            dimension_semantics=("parallel", "arbitrary"),
        ),
    )(x2, y2)

    # Tiny final reduction + scalar math on (num_par, 8, 128) partials.
    intersection = jnp.sum(inter_parts)
    total = jnp.sum(total_parts)
    union = total - intersection
    iou = (intersection + smooth) / (union + smooth)
    return (1.0 - iou).astype(jnp.float32)


def iou_loss_ref(inputs, targets, smooth=1.0, use_sigmoid=False):
    """Pure-JAX reference matching the PyTorch module."""
    x = inputs.reshape(-1).astype(jnp.float32)
    y = targets.reshape(-1).astype(jnp.float32)
    if use_sigmoid:
        x = jax.nn.sigmoid(x)
    intersection = jnp.sum(x * y)
    total = jnp.sum(x + y)
    union = total - intersection
    return 1.0 - (intersection + smooth) / (union + smooth)


if __name__ == "__main__":
    key = jax.random.PRNGKey(0)
    k1, k2, k3, k4, k5, k6 = jax.random.split(key, 6)

    # 1) NCHW segmentation-style inputs, aligned size, no sigmoid.
    inputs = jax.random.uniform(k1, (2, 4, 16, 16), dtype=jnp.float32)
    targets = (jax.random.uniform(k2, (2, 4, 16, 16)) > 0.5).astype(jnp.float32)
    loss = jax.block_until_ready(iou_loss(inputs, targets, smooth=1.0))
    ref = iou_loss_ref(inputs, targets, smooth=1.0)
    assert jnp.allclose(loss, ref, rtol=1e-5, atol=1e-5), (loss, ref)

    # 2) Non-aligned size + sigmoid (exercises zero-pad tail masking).
    a = jax.random.normal(k3, (3, 5, 7), dtype=jnp.float32)
    b = (jax.random.uniform(k4, (3, 5, 7)) > 0.5).astype(jnp.float32)
    loss2 = jax.block_until_ready(iou_loss(a, b, smooth=1.0, use_sigmoid=True))
    ref2 = iou_loss_ref(a, b, smooth=1.0, use_sigmoid=True)
    assert jnp.allclose(loss2, ref2, rtol=1e-5, atol=1e-5), (loss2, ref2)

    # 3) Multi-block path with a ragged last block (small block size forces the
    #    2-slice parallel grid + OOB masking at small test shapes).
    c_in = jax.random.uniform(k5, (4, 25, 25), dtype=jnp.float32)
    c_tg = (jax.random.uniform(k6, (4, 25, 25)) > 0.5).astype(jnp.float32)
    loss3 = jax.block_until_ready(
        iou_loss(c_in, c_tg, smooth=1.0, max_block_rows=16))
    ref3 = iou_loss_ref(c_in, c_tg, smooth=1.0)
    assert jnp.allclose(loss3, ref3, rtol=1e-5, atol=1e-5), (loss3, ref3)

    # 4) Odd number of blocks (exercises the clamped duplicate step on the
    #    second parallel slice) + sigmoid tail masking.
    d_in = jax.random.normal(k1, (3, 10, 100), dtype=jnp.float32)
    d_tg = (jax.random.uniform(k2, (3, 10, 100)) > 0.5).astype(jnp.float32)
    loss4 = jax.block_until_ready(
        iou_loss(d_in, d_tg, smooth=1.0, use_sigmoid=True, max_block_rows=8))
    ref4 = iou_loss_ref(d_in, d_tg, smooth=1.0, use_sigmoid=True)
    assert jnp.allclose(loss4, ref4, rtol=1e-5, atol=1e-5), (loss4, ref4)

    print("KERNEL_OK")
</pallas_src>

<mosaic_0001>
module attributes {stable_mosaic.version = 11 : i64} {
  func.func @_iou_kernel(%arg0: i32, %arg1: i32, %arg2: memref<16x128xf32, #tpu.memory_space<vmem>>, %arg3: memref<16x128xf32, #tpu.memory_space<vmem>>, %arg4: memref<1x8x128xf32, #tpu.memory_space<vmem>>, %arg5: memref<1x8x128xf32, #tpu.memory_space<vmem>>) attributes {dimension_semantics = [#tpu.dimension_semantics<parallel>, #tpu.dimension_semantics<arbitrary>], iteration_bounds = array<i64: 1, 1>, scalar_prefetch = 0 : i64, scratch_operands = 0 : i64, tpu.core_type = #tpu.core_type<tc>, window_params = [{transform_indices = @transform_0, window_bounds = array<i64: 16, 128>}, {transform_indices = @transform_1, window_bounds = array<i64: 16, 128>}, {transform_indices = @transform_2, window_bounds = array<i64: 1, 8, 128>}, {transform_indices = @transform_3, window_bounds = array<i64: 1, 8, 128>}]} {
    %c1_i32 = arith.constant 1 : i32
    %0 = arith.muli %arg0, %c1_i32 : i32
    %1 = arith.addi %0, %arg1 : i32
    %c0_i32 = arith.constant 0 : i32
    %2 = arith.cmpi eq, %arg1, %c0_i32 : i32
    %3 = arith.extui %2 : i1 to i32
    %c0_i32_0 = arith.constant 0 : i32
    %4 = arith.cmpi ne, %3, %c0_i32_0 : i32
    scf.if %4 {
      %cst = arith.constant 0.000000e+00 : f32
      %10 = vector.broadcast %cst : f32 to vector<1x8x128xf32>
      %c0_6 = arith.constant 0 : index
      %c0_7 = arith.constant 0 : index
      %c0_8 = arith.constant 0 : index
      %11 = vector.load %arg4[%c0_6, %c0_7, %c0_8] : memref<1x8x128xf32, #tpu.memory_space<vmem>>, vector<1x8x128xf32>
      tpu.vector_store %arg4[%c0_6, %c0_7, %c0_8], %10 {strides = array<i32>} : memref<1x8x128xf32, #tpu.memory_space<vmem>>, vector<1x8x128xf32>,
      %cst_9 = arith.constant 0.000000e+00 : f32
      %12 = vector.broadcast %cst_9 : f32 to vector<1x8x128xf32>
      %c0_10 = arith.constant 0 : index
      %c0_11 = arith.constant 0 : index
      %c0_12 = arith.constant 0 : index
      %13 = vector.load %arg5[%c0_10, %c0_11, %c0_12] : memref<1x8x128xf32, #tpu.memory_space<vmem>>, vector<1x8x128xf32>
      tpu.vector_store %arg5[%c0_10, %c0_11, %c0_12], %12 {strides = array<i32>} : memref<1x8x128xf32, #tpu.memory_space<vmem>>, vector<1x8x128xf32>,
    } else {
    }
    %c0 = arith.constant 0 : index
    %c0_1 = arith.constant 0 : index
    %5 = vector.load %arg2[%c0, %c0_1] : memref<16x128xf32, #tpu.memory_space<vmem>>, vector<16x128xf32>
    %c0_2 = arith.constant 0 : index
    %c0_3 = arith.constant 0 : index
    %6 = vector.load %arg3[%c0_2, %c0_3] : memref<16x128xf32, #tpu.memory_space<vmem>>, vector<16x128xf32>
    %c1_i32_4 = arith.constant 1 : i32
    %7 = arith.cmpi slt, %1, %c1_i32_4 : i32
    %8 = arith.extui %7 : i1 to i32
    %c0_i32_5 = arith.constant 0 : i32
    %9 = arith.cmpi ne, %8, %c0_i32_5 : i32
    scf.if %9 {
      %c0_6 = arith.constant 0 : index
      %c0_7 = arith.constant 0 : index
      %c0_8 = arith.constant 0 : index
      %10 = vector.load %arg4[%c0_6, %c0_7, %c0_8] : memref<1x8x128xf32, #tpu.memory_space<vmem>>, vector<1x8x128xf32>
      %11 = arith.mulf %5, %6 : vector<16x128xf32>
      %12 = vector.shape_cast %11 : vector<16x128xf32> to vector<2x8x128xf32>
      %cst = arith.constant dense<0.000000e+00> : vector<8x128xf32>
      %13 = vector.multi_reduction <add>, %12, %cst [0] : vector<2x8x128xf32> to vector<8x128xf32>
      %14 = vector.shape_cast %13 : vector<8x128xf32> to vector<1x8x128xf32>
      %15 = arith.addf %10, %14 : vector<1x8x128xf32>
      %c0_9 = arith.constant 0 : index
      %c0_10 = arith.constant 0 : index
      %c0_11 = arith.constant 0 : index
      %16 = vector.load %arg4[%c0_9, %c0_10, %c0_11] : memref<1x8x128xf32, #tpu.memory_space<vmem>>, vector<1x8x128xf32>
      tpu.vector_store %arg4[%c0_9, %c0_10, %c0_11], %15 {strides = array<i32>} : memref<1x8x128xf32, #tpu.memory_space<vmem>>, vector<1x8x128xf32>,
      %c0_12 = arith.constant 0 : index
      %c0_13 = arith.constant 0 : index
      %c0_14 = arith.constant 0 : index
      %17 = vector.load %arg5[%c0_12, %c0_13, %c0_14] : memref<1x8x128xf32, #tpu.memory_space<vmem>>, vector<1x8x128xf32>
      %18 = arith.addf %5, %6 : vector<16x128xf32>
      %19 = vector.shape_cast %18 : vector<16x128xf32> to vector<2x8x128xf32>
      %cst_15 = arith.constant dense<0.000000e+00> : vector<8x128xf32>
      %20 = vector.multi_reduction <add>, %19, %cst_15 [0] : vector<2x8x128xf32> to vector<8x128xf32>
      %21 = vector.shape_cast %20 : vector<8x128xf32> to vector<1x8x128xf32>
      %22 = arith.addf %17, %21 : vector<1x8x128xf32>
      %c0_16 = arith.constant 0 : index
      %c0_17 = arith.constant 0 : index
      %c0_18 = arith.constant 0 : index
      %23 = vector.load %arg5[%c0_16, %c0_17, %c0_18] : memref<1x8x128xf32, #tpu.memory_space<vmem>>, vector<1x8x128xf32>
      tpu.vector_store %arg5[%c0_16, %c0_17, %c0_18], %22 {strides = array<i32>} : memref<1x8x128xf32, #tpu.memory_space<vmem>>, vector<1x8x128xf32>,
    } else {
    }
    return
  }
  func.func @transform_0(%arg0: i32, %arg1: i32) -> (i32, i32) {
    %c1_i32 = arith.constant 1 : i32
    %0 = arith.muli %arg0, %c1_i32 : i32
    %1 = arith.addi %0, %arg1 : i32
    %c0_i32 = arith.constant 0 : i32
    %2 = arith.minsi %1, %c0_i32 : i32
    %c0_i32_0 = arith.constant 0 : i32
    %c0_i32_1 = arith.constant 0 : i32
    return %2, %c0_i32_0 : i32, i32
  }
  func.func @transform_1(%arg0: i32, %arg1: i32) -> (i32, i32) {
    %c1_i32 = arith.constant 1 : i32
    %0 = arith.muli %arg0, %c1_i32 : i32
    %1 = arith.addi %0, %arg1 : i32
    %c0_i32 = arith.constant 0 : i32
    %2 = arith.minsi %1, %c0_i32 : i32
    %c0_i32_0 = arith.constant 0 : i32
    %c0_i32_1 = arith.constant 0 : i32
    return %2, %c0_i32_0 : i32, i32
  }
  func.func @transform_2(%arg0: i32, %arg1: i32) -> (i32, i32, i32) {
    %c0_i32 = arith.constant 0 : i32
    %c0_i32_0 = arith.constant 0 : i32
    %c0_i32_1 = arith.constant 0 : i32
    return %arg0, %c0_i32, %c0_i32_0 : i32, i32, i32
  }
  func.func @transform_3(%arg0: i32, %arg1: i32) -> (i32, i32, i32) {
    %c0_i32 = arith.constant 0 : i32
    %c0_i32_0 = arith.constant 0 : i32
    %c0_i32_1 = arith.constant 0 : i32
    return %arg0, %c0_i32, %c0_i32_0 : i32, i32, i32
  }
}

</mosaic_0001>

<bundles_post_ra>
// kernel: tpu_custom_call.1
= control target key start
LH: loop header
LB: loop body
LE: loop exit
PB: predicated region body
PF: predicated region fallthrough
CT: control target
= control target key end

     0   :  { %9 = vsyncpa [#allocation3], 0  ;;  %s301_s0 = inlined_call_operand.hbm [shape: f32[16,128], index: 0, kind: input, shape index: {}]   ;;  %s302_s1 = inlined_call_operand.hbm [shape: f32[16,128], index: 1, kind: input, shape index: {}]   ;;  %s303_s2 = inlined_call_operand.hbm [shape: f32[1,8,128], index: 2, kind: output, shape index: {0}]   ;;  %s304_s3 = inlined_call_operand.hbm [shape: f32[1,8,128], index: 3, kind: output, shape index: {1}]  }
   0x1   :  { %10 = vsyncpa [#allocation6], 0 }
   0x2   :  { %11 = vsyncpa [#allocation4], 0 }
   0x3   :  { %12 = vsyncpa [#allocation9], 0  ;;  %s227_s12 = smov [#allocation2]   ;;  %s131_s16 = scalar_lea.hbm %s301_s0, 256 }
   0x4   :  { %s24_s13 = sshll.u32 %s227_s12, 4  ;;  %p132_p0 = scmp.ne.s32.totalorder %s301_s0, %s131_s16  ;;  %s25_s13 = int_to_ptr.vmem [resolvable:$true] %s24_s13 }
   0x5   :  { %p135_p1 = scmp.lt.u32.totalorder %s131_s16, %s301_s0 }
   0x7   :  { %p137_p2 = pnand %p135_p1, %p132_p0 }
   0x9   :  { %140 = shalt.err (!%p137_p2)
}
   0xa   :  { %s141_s21 = scalar_lea.vmem %s25_s13, 256  ;;  %p146_p4 = scmp.lt.s32.totalorder %s25_s13, %s25_s13 }
   0xb   :  { %p142_p3 = scmp.ne.s32.totalorder %s25_s13, %s141_s21  ;;  %p147_p5 = scmp.lt.s32.totalorder %s141_s21, %s141_s21 }
   0xd   :  { %p148_p6 = por %p147_p5, %p146_p4 }
   0xf   :  { %p149_p7 = pnand %p148_p6, %p142_p3 }
  0x11   :  { %152 = shalt.err (!%p149_p7)
}
  0x12   :  { %s228_s22 = smov 128   ;;  %s229_s23 = smov 8  }
  0x13   :  { %30 = dma.hbm_to_vmem [thread:$0]  %s301_s0, 256, %s25_s13, [#allocation3], %s228_s22, %s228_s22, %s229_s23  }
  0x14   :  { %s230_s26 = smov [#allocation5]   ;;  %s153_s30 = scalar_lea.hbm %s302_s1, 256 }
  0x15   :  { %s42_s27 = sshll.u32 %s230_s26, 4  ;;  %p154_p8 = scmp.ne.s32.totalorder %s302_s1, %s153_s30  ;;  %s43_s27 = int_to_ptr.vmem [resolvable:$true] %s42_s27 }
  0x16   :  { %p157_p9 = scmp.lt.u32.totalorder %s153_s30, %s302_s1 }
  0x18   :  { %p159_p10 = pnand %p157_p9, %p154_p8 }
  0x1a   :  { %162 = shalt.err (!%p159_p10)
}
  0x1b   :  { %s163_s8 = scalar_lea.vmem %s43_s27, 256  ;;  %p168_p12 = scmp.lt.s32.totalorder %s43_s27, %s43_s27 }
  0x1c   :  { %p164_p11 = scmp.ne.s32.totalorder %s43_s27, %s163_s8  ;;  %p169_p13 = scmp.lt.s32.totalorder %s163_s8, %s163_s8 }
  0x1e   :  { %p170_p0 = por %p169_p13, %p168_p12 }
  0x20   :  { %p171_p1 = pnand %p170_p0, %p164_p11 }
  0x22   :  { %174 = shalt.err (!%p171_p1)
}
  0x23   :  { %48 = dma.hbm_to_vmem [thread:$0]  %s302_s1, 256, %s43_s27, [#allocation6], %s228_s22, %s228_s22, %s229_s23  }
  0x24   :  { %219 = dma.done.wait [#allocation3], 256  }
  0x25   :  { %220 = vsyncadd [#allocation3], 4294967040 }
  0x26   :  { %221 = dma.done.wait [#allocation6], 256  }
  0x27   :  { %222 = vsyncadd [#allocation6], 4294967040  ;;  %v70_v0 = vld [vmem:[#allocation2] sm:$0xff]  ;;  %v71_v1 = vld [vmem:[#allocation2 + $0x8] sm:$0xff]  ;;  %s231_s10 = smov [#allocation7]   ;;  %s232_s12 = smov [#allocation8]  }
  0x28   :  { %v72_v2 = vld [vmem:[#allocation5] sm:$0xff]  ;;  %v73_v3 = vld [vmem:[#allocation5 + $0x8] sm:$0xff]  ;;  %s96_s11 = sshll.u32 %s231_s10, 4  ;;  %s106_s13 = sshll.u32 %s232_s12, 4  ;;  %s97_s11 = int_to_ptr.vmem [resolvable:$true] %s96_s11  ;;  %s107_s13 = int_to_ptr.vmem [resolvable:$true] %s106_s13 }
  0x29   :  { %v79_v4 = vmul.f32 %v72_v2, %v70_v0  ;;  %v85_v5 = vadd.f32 %v72_v2, %v70_v0  ;;  %v80_v6 = vmul.f32 %v73_v3, %v71_v1  ;;  %v86_v7 = vadd.f32 %v73_v3, %v71_v1  ;;  %s175_s1 = scalar_lea.vmem %s97_s11, 128  ;;  %p180_p3 = scmp.lt.s32.totalorder %s97_s11, %s97_s11 }
  0x2a   :  { %p176_p2 = scmp.ne.s32.totalorder %s97_s11, %s175_s1  ;;  %p181_p4 = scmp.lt.s32.totalorder %s175_s1, %s175_s1 }
  0x2b   :  { %v81_v8 = vadd.f32 %v80_v6, %v79_v4  ;;  %v87_v9 = vadd.f32 %v86_v7, %v85_v5 }
  0x2c   :  { %p182_p5 = por %p181_p4, %p180_p3 }
  0x2d   :  { %83 = vst [vmem:[#allocation7] sm:$0xff] %v81_v8  ;;  %89 = vst [vmem:[#allocation8] sm:$0xff] %v87_v9 }
  0x2e   :  { %p183_p6 = pnand %p182_p5, %p176_p2 }
  0x30   :  { %186 = shalt.err (!%p183_p6)
}
  0x31   :  { %s187_s16 = scalar_lea.hbm %s303_s2, 128 }
  0x32   :  { %p188_p7 = scmp.ne.s32.totalorder %s303_s2, %s187_s16  ;;  %p191_p8 = scmp.lt.u32.totalorder %s187_s16, %s303_s2 }
  0x34   :  { %p193_p9 = pnand %p191_p8, %p188_p7 }
  0x36   :  { %196 = shalt.err (!%p193_p9)
}
  0x37   :  { %99 = dma.vmem_to_hbm [thread:$0]  %s97_s11, 128, %s303_s2, [#allocation4]  }
  0x38   :  { %s197_s23 = scalar_lea.vmem %s107_s13, 128  ;;  %p202_p11 = scmp.lt.s32.totalorder %s107_s13, %s107_s13 }
  0x39   :  { %p198_p10 = scmp.ne.s32.totalorder %s107_s13, %s197_s23  ;;  %p203_p12 = scmp.lt.s32.totalorder %s197_s23, %s197_s23 }
  0x3b   :  { %p204_p13 = por %p203_p12, %p202_p11 }
  0x3d   :  { %p205_p0 = pnand %p204_p13, %p198_p10 }
  0x3f   :  { %208 = shalt.err (!%p205_p0)
}
  0x40   :  { %s209_s26 = scalar_lea.hbm %s304_s3, 128 }
  0x41   :  { %p210_p1 = scmp.ne.s32.totalorder %s304_s3, %s209_s26  ;;  %p213_p2 = scmp.lt.u32.totalorder %s209_s26, %s304_s3 }
  0x43   :  { %p215_p3 = pnand %p213_p2, %p210_p1 }
  0x45   :  { %218 = shalt.err (!%p215_p3)
}
  0x46   :  { %109 = dma.vmem_to_hbm [thread:$0]  %s107_s13, 128, %s304_s3, [#allocation9]  }
  0x47   :  { %223 = dma.done.wait [#allocation4], 128  }
  0x48   :  { %224 = vsyncadd [#allocation4], 4294967168 }
  0x49   :  { %225 = dma.done.wait [#allocation9], 128  }
  0x4a   :  { %226 = vsyncadd [#allocation9], 4294967168 }
  0x4b   :  { %116 = vsyncpa [#allocation3], 1 }
  0x4c   :  { %117 = vsyncpa [#allocation6], 1 }
  0x4d   :  { %118 = vsyncpa [#allocation4], 1 }
  0x4e   :  { %119 = vsyncpa [#allocation9], 1 }

</bundles_post_ra>
